<compile_context>
chip_gen: v7x
topology: tpu7x:2x2x1
jax: 0.10.0
libtpu: 0.0.40
codegen_flags: <defaults>
</compile_context>

<pallas_src>
import numpy as np
import jax
import jax.numpy as jnp
from jax.experimental import pallas as pl
from jax.experimental.pallas import tpu as pltpu


def _make_kernel(group_size):
    inv_g2 = np.float32(1.0 / (float(group_size) * float(group_size)))

    def kernel(f1_ref, f2_ref, out_ref):
        # Subtract in the input dtype, upcast once (single f32 tensor live).
        diff = (f1_ref[...] - f2_ref[...]).astype(jnp.float32)     # (G, group, D)
        # sum over rows; mean1 - mean2 == row_sum / group
        row_sum = jnp.sum(diff, axis=1)                            # (G, D)
        # ||mean1 - mean2||^2 = ||row_sum||^2 / group^2 (constant folded in)
        sse = jnp.sum(row_sum * row_sum, axis=-1) * inv_g2         # (G,)
        out_ref[...] = sse.reshape(out_ref.shape)

    return kernel


def hetero_loss1_pallas(feat1, feat2, label1, label2, margin=0.1,
                        target_block_bytes=4 * 1024 * 1024):
    """JAX/Pallas equivalent of hetero_loss1.forward with dist_type='l2'.

    feat1, feat2: (N, D) arrays.
    label1, label2: host-side integer label arrays; only the number of unique
    labels in label1 is used (it determines the static chunking), so it is
    resolved at trace time with numpy — exactly as in the PyTorch module.
    """
    del label2  # unused by the reference forward
    feat1 = jnp.asarray(feat1)
    feat2 = jnp.asarray(feat2)
    N, D = feat1.shape
    label_num = int(len(np.unique(np.asarray(label1))))
    # TODO(synk): torch.chunk tolerates ragged last chunks; here we require
    # equal-sized groups (matches the module's intended usage).
    assert N % label_num == 0, "N must be divisible by the number of unique labels"
    group = N // label_num

    # (label_num, group, D): every block's last two dims equal the full array
    # dims, so any group/D size lowers cleanly.
    f1 = feat1.reshape(label_num, group, D)
    f2 = feat2.reshape(label_num, group, D)

    # Fuse G label-groups per grid step so each input block is ~target bytes.
    itemsize = int(feat1.dtype.itemsize)
    bytes_per_group = max(1, group * D * itemsize)
    G = int(max(1, min(label_num, target_block_bytes // bytes_per_group)))
    num_steps = -(-label_num // G)        # ceil-div
    l_pad = num_steps * G
    if l_pad != label_num:
        pad = l_pad - label_num
        f1 = jnp.pad(f1, ((0, pad), (0, 0), (0, 0)))
        f2 = jnp.pad(f2, ((0, pad), (0, 0), (0, 0)))

    kernel = _make_kernel(group)

    per_group = pl.pallas_call(
        kernel,
        out_shape=jax.ShapeDtypeStruct((num_steps, 1, G), jnp.float32),
        grid_spec=pltpu.PrefetchScalarGridSpec(
            num_scalar_prefetch=0,
            grid=(num_steps,),
            in_specs=[
                pl.BlockSpec((G, group, D), lambda i: (i, 0, 0)),
                pl.BlockSpec((G, group, D), lambda i: (i, 0, 0)),
            ],
            out_specs=pl.BlockSpec((1, 1, G), lambda i: (i, 0, 0)),
        ),
        compiler_params=pltpu.CompilerParams(
            dimension_semantics=("parallel",),       # distinct output block / step
            vmem_limit_bytes=32 * 1024 * 1024,
        ),
    )(f1, f2)

    # Hinge + final sum over a handful of scalars: negligible, done in XLA.
    per_group = per_group.reshape(-1)[:label_num]
    return jnp.sum(jnp.maximum(per_group - jnp.float32(margin), jnp.float32(0.0)))


def _reference(feat1, feat2, label1, margin=0.1):
    """Pure-numpy reference mirroring the PyTorch forward (l2 path)."""
    feat1 = np.asarray(feat1, dtype=np.float64)
    feat2 = np.asarray(feat2, dtype=np.float64)
    label_num = len(np.unique(np.asarray(label1)))
    chunks1 = np.split(feat1, label_num, axis=0)
    chunks2 = np.split(feat2, label_num, axis=0)
    dist = 0.0
    for c1, c2 in zip(chunks1, chunks2):
        m1 = c1.mean(axis=0)
        m2 = c2.mean(axis=0)
        sse = np.sum((m1 - m2) ** 2)
        dist += max(0.0, sse - margin)
    return dist


if __name__ == "__main__":
    # Small deterministic example: N=16 samples, D=32 features, 2 identities
    # (8 samples per identity in each modality's feature batch).
    key = jax.random.PRNGKey(0)
    k1, k2 = jax.random.split(key)
    N, D, label_num = 16, 32, 2

    feat1 = jax.random.normal(k1, (N, D), dtype=jnp.float32)
    feat2 = jax.random.normal(k2, (N, D), dtype=jnp.float32)
    label1 = np.repeat(np.arange(label_num), N // label_num)  # [0,0,...,1,1,...]
    label2 = label1.copy()

    loss = hetero_loss1_pallas(feat1, feat2, label1, label2, margin=0.1)
    loss = jax.block_until_ready(loss)

    ref = _reference(np.asarray(feat1), np.asarray(feat2), label1, margin=0.1)
    assert np.allclose(float(loss), ref, rtol=1e-4, atol=1e-5), (float(loss), ref)

    print("KERNEL_OK")
</pallas_src>

<mosaic_0001>
module attributes {stable_mosaic.version = 11 : i64} {
  func.func @kernel(%arg0: i32, %arg1: memref<2x8x32xf32, #tpu.memory_space<vmem>>, %arg2: memref<2x8x32xf32, #tpu.memory_space<vmem>>, %arg3: memref<1x1x2xf32, #tpu.memory_space<vmem>>) attributes {dimension_semantics = [#tpu.dimension_semantics<parallel>], iteration_bounds = array<i64: 1>, scalar_prefetch = 0 : i64, scratch_operands = 0 : i64, tpu.core_type = #tpu.core_type<tc>, window_params = [{transform_indices = @transform_0, window_bounds = array<i64: 2, 8, 32>}, {transform_indices = @transform_1, window_bounds = array<i64: 2, 8, 32>}, {transform_indices = @transform_2, window_bounds = array<i64: 1, 1, 2>}]} {
    %c0 = arith.constant 0 : index
    %c0_0 = arith.constant 0 : index
    %c0_1 = arith.constant 0 : index
    %0 = vector.load %arg1[%c0, %c0_0, %c0_1] : memref<2x8x32xf32, #tpu.memory_space<vmem>>, vector<2x8x32xf32>
    %c0_2 = arith.constant 0 : index
    %c0_3 = arith.constant 0 : index
    %c0_4 = arith.constant 0 : index
    %1 = vector.load %arg2[%c0_2, %c0_3, %c0_4] : memref<2x8x32xf32, #tpu.memory_space<vmem>>, vector<2x8x32xf32>
    %2 = arith.subf %0, %1 : vector<2x8x32xf32>
    %cst = arith.constant dense<0.000000e+00> : vector<2x32xf32>
    %3 = vector.multi_reduction <add>, %2, %cst [1] : vector<2x8x32xf32> to vector<2x32xf32>
    %4 = arith.mulf %3, %3 : vector<2x32xf32>
    %cst_5 = arith.constant dense<0.000000e+00> : vector<2xf32>
    %5 = vector.multi_reduction <add>, %4, %cst_5 [1] : vector<2x32xf32> to vector<2xf32>
    %cst_6 = arith.constant 1.562500e-02 : f32
    %6 = vector.broadcast %cst_6 : f32 to vector<2xf32>
    %7 = arith.mulf %5, %6 : vector<2xf32>
    %8 = vector.shape_cast %7 : vector<2xf32> to vector<1x1x2xf32>
    %c0_7 = arith.constant 0 : index
    %c0_8 = arith.constant 0 : index
    %c0_9 = arith.constant 0 : index
    %9 = vector.load %arg3[%c0_7, %c0_8, %c0_9] : memref<1x1x2xf32, #tpu.memory_space<vmem>>, vector<1x1x2xf32>
    tpu.vector_store %arg3[%c0_7, %c0_8, %c0_9], %8 {strides = array<i32>} : memref<1x1x2xf32, #tpu.memory_space<vmem>>, vector<1x1x2xf32>,
    return
  }
  func.func @transform_0(%arg0: i32) -> (i32, i32, i32) {
    %c0_i32 = arith.constant 0 : i32
    %c0_i32_0 = arith.constant 0 : i32
    %c0_i32_1 = arith.constant 0 : i32
    return %arg0, %c0_i32, %c0_i32_0 : i32, i32, i32
  }
  func.func @transform_1(%arg0: i32) -> (i32, i32, i32) {
    %c0_i32 = arith.constant 0 : i32
    %c0_i32_0 = arith.constant 0 : i32
    %c0_i32_1 = arith.constant 0 : i32
    return %arg0, %c0_i32, %c0_i32_0 : i32, i32, i32
  }
  func.func @transform_2(%arg0: i32) -> (i32, i32, i32) {
    %c0_i32 = arith.constant 0 : i32
    %c0_i32_0 = arith.constant 0 : i32
    %c0_i32_1 = arith.constant 0 : i32
    return %arg0, %c0_i32, %c0_i32_0 : i32, i32, i32
  }
}

</mosaic_0001>

<bundles_post_ra>
// kernel: tpu_custom_call.1
= control target key start
LH: loop header
LB: loop body
LE: loop exit
PB: predicated region body
PF: predicated region fallthrough
CT: control target
= control target key end

     0   :  { %7 = vsyncpa [#allocation3], 0  ;;  %s232_s0 = inlined_call_operand.hbm [shape: f32[2,8,32], index: 0, kind: input, shape index: {}]   ;;  %s233_s1 = inlined_call_operand.hbm [shape: f32[2,8,32], index: 1, kind: input, shape index: {}]   ;;  %s234_s2 = inlined_call_operand.hbm [shape: f32[1,1,2], index: 2, kind: output, shape index: {}]  }
   0x1   :  { %8 = vsyncpa [#allocation6], 0 }
   0x2   :  { %9 = vsyncpa [#allocation4], 0  ;;  %s176_s9 = smov [#allocation2]   ;;  %s104_s13 = scalar_lea.hbm %s232_s0, 256 }
   0x3   :  { %s15_s10 = sshll.u32 %s176_s9, 4  ;;  %p105_p0 = scmp.ne.s32.totalorder %s232_s0, %s104_s13  ;;  %s16_s10 = int_to_ptr.vmem [resolvable:$true] %s15_s10 }
   0x4   :  { %p108_p1 = scmp.lt.u32.totalorder %s104_s13, %s232_s0 }
   0x6   :  { %p110_p2 = pnand %p108_p1, %p105_p0 }
   0x8   :  { %113 = shalt.err (!%p110_p2)
}
   0x9   :  { %s114_s18 = scalar_lea.vmem %s16_s10, 256  ;;  %p119_p4 = scmp.lt.s32.totalorder %s16_s10, %s16_s10 }
   0xa   :  { %p115_p3 = scmp.ne.s32.totalorder %s16_s10, %s114_s18  ;;  %p120_p5 = scmp.lt.s32.totalorder %s114_s18, %s114_s18 }
   0xc   :  { %p121_p6 = por %p120_p5, %p119_p4 }
   0xe   :  { %p122_p7 = pnand %p121_p6, %p115_p3 }
  0x10   :  { %125 = shalt.err (!%p122_p7)
}
  0x11   :  { %s177_s19 = smov 128   ;;  %s178_s20 = smov 8  }
  0x12   :  { %21 = dma.hbm_to_vmem [thread:$0]  %s232_s0, 256, %s16_s10, [#allocation3], %s177_s19, %s177_s19, %s178_s20  }
  0x13   :  { %s179_s23 = smov [#allocation5]   ;;  %s126_s27 = scalar_lea.hbm %s233_s1, 256 }
  0x14   :  { %s27_s24 = sshll.u32 %s179_s23, 4  ;;  %p127_p8 = scmp.ne.s32.totalorder %s233_s1, %s126_s27  ;;  %s28_s24 = int_to_ptr.vmem [resolvable:$true] %s27_s24 }
  0x15   :  { %p130_p9 = scmp.lt.u32.totalorder %s126_s27, %s233_s1 }
  0x17   :  { %p132_p10 = pnand %p130_p9, %p127_p8 }
  0x19   :  { %135 = shalt.err (!%p132_p10)
}
  0x1a   :  { %s136_s4 = scalar_lea.vmem %s28_s24, 256  ;;  %p141_p12 = scmp.lt.s32.totalorder %s28_s24, %s28_s24 }
  0x1b   :  { %p137_p11 = scmp.ne.s32.totalorder %s28_s24, %s136_s4  ;;  %p142_p13 = scmp.lt.s32.totalorder %s136_s4, %s136_s4 }
  0x1d   :  { %p143_p0 = por %p142_p13, %p141_p12 }
  0x1f   :  { %p144_p1 = pnand %p143_p0, %p137_p11 }
  0x21   :  { %147 = shalt.err (!%p144_p1)
}
  0x22   :  { %33 = dma.hbm_to_vmem [thread:$0]  %s233_s1, 256, %s28_s24, [#allocation6], %s177_s19, %s177_s19, %s178_s20  }
  0x23   :  { %170 = dma.done.wait [#allocation3], 256  }
  0x24   :  { %171 = vsyncadd [#allocation3], 4294967040 }
  0x25   :  { %172 = dma.done.wait [#allocation6], 256  }
  0x26   :  { %173 = vsyncadd [#allocation6], 4294967040  ;;  %v40_v0 = vld [vmem:[#allocation2] sm:$0xff]  ;;  %v41_v1 = vld [vmem:[#allocation2 + $0x8] sm:$0xff]  ;;  %vm46_vm0 = vcmask 261120   ;;  %vm65_vm1 = vcmask 1041409   ;;  %v74_v24 = vlaneseq }
  0x27   :  { %v42_v2 = vld [vmem:[#allocation5] sm:$0xff]  ;;  %v43_v3 = vld [vmem:[#allocation5 + $0x8] sm:$0xff]  ;;  %vm68_vm2 = vcmask 254976   ;;  %s180_s1 = smov [#allocation7]   ;;  %vm81_vm3 = vcmask 8192  }
  0x28   :  { %v44_v4 = vsub.f32 %v40_v0, %v42_v2  ;;  %v45_v5 = vsub.f32 %v41_v1, %v43_v3  ;;  %v75_v25 = vand.u32 127, %v74_v24  ;;  %v77_v26 = vshrl.u32 %v74_v24, 7  ;;  %s89_s6 = sshll.u32 %s180_s1, 4  ;;  %s90_s6 = int_to_ptr.vmem [resolvable:$true] %s89_s6 }
  0x29   :  { %s148_s7 = scalar_lea.vmem %s90_s6, 16  ;;  %s152_s8 = scalar_lea.vmem %s90_s6, 32 }
  0x2a   :  { %v47_v6 = vsel %vm46_vm0, %v44_v4, 0.0  ;;  %v54_v8 = vsel %vm46_vm0, %v45_v5, 0.0  ;;  %v78_v27 = vsub.s32 %v75_v25, %v77_v26  ;;  %p149_p2 = scmp.ne.s32.totalorder %s90_s6, %s148_s7  ;;  %p153_p3 = scmp.lt.s32.totalorder %s90_s6, %s90_s6 }
  0x2b   :  { %v48_v7 = vrot.slane %v47_v6, 4  ;;  %v55_v9 = vrot.slane %v54_v8, 4  ;;  %p154_p4 = scmp.lt.s32.totalorder %s152_s8, %s148_s7 }
  0x2d   :  { %v49_v10 = vadd.f32 %v48_v7, %v47_v6  ;;  %v56_v11 = vadd.f32 %v55_v9, %v54_v8  ;;  %p155_p5 = por %p154_p4, %p153_p3 }
  0x2f   :  { %v50_v12 = vrot.slane %v49_v10, 2  ;;  %v57_v13 = vrot.slane %v56_v11, 2  ;;  %p156_p6 = pnand %p155_p5, %p149_p2 }
  0x31   :  { %v51_v14 = vadd.f32 %v50_v12, %v49_v10  ;;  %v58_v15 = vadd.f32 %v57_v13, %v56_v11 }
  0x33   :  { %v52_v16 = vrot.slane %v51_v14, 1  ;;  %v59_v17 = vrot.slane %v58_v15, 1 }
  0x35   :  { %v53_v18 = vadd.f32 %v52_v16, %v51_v14  ;;  %v60_v19 = vadd.f32 %v59_v17, %v58_v15 }
  0x37   :  { %v61_v20 = vmul.f32 %v53_v18, %v53_v18  ;;  %v62_v21 = vmul.f32 %v60_v19, %v60_v19 }
  0x39   :  { %v66_v22 = vsel %vm65_vm1, %v62_v21, %v61_v20 }
  0x3a   :  { %v69_v23 = vsel %vm68_vm2, %v66_v22, 0.0 }
  0x3b   :  { %70 = vadd.xlane.f32.xlu0 %v69_v23 }
  0xc8   :  { %v71_v28 = vpop.xlane.xlu0 %70 }
  0xc9   :  { %v72_v29 = vmul.f32 0.015625, %v71_v28 }
  0xcb   :  { %v79_v30 = vrot.slane %v72_v29, %v78_v27 }
  0xcd   :  { %82 = vst.msk [vmem:[#allocation7] sm:$0x1] %vm81_vm3, %v79_v30 }
  0xce   :  { %159 = shalt.err (!%p156_p6)
}
  0xcf   :  { %s160_s11 = scalar_lea.hbm %s234_s2, 16 }
  0xd0   :  { %p161_p7 = scmp.ne.s32.totalorder %s234_s2, %s160_s11  ;;  %p164_p8 = scmp.lt.u32.totalorder %s160_s11, %s234_s2 }
  0xd2   :  { %p166_p9 = pnand %p164_p8, %p161_p7 }
  0xd4   :  { %169 = shalt.err (!%p166_p9)
}
  0xd5   :  { %92 = dma.vmem_to_hbm [thread:$0]  %s90_s6, 16, %s234_s2, [#allocation4]  }
  0xd6   :  { %174 = dma.done.wait [#allocation4], 16  }
  0xd7   :  { %175 = vsyncadd [#allocation4], 4294967280 }
  0xd8   :  { %96 = vsyncpa [#allocation3], 1 }
  0xd9   :  { %97 = vsyncpa [#allocation6], 1 }
  0xda   :  { %98 = vsyncpa [#allocation4], 1 }

</bundles_post_ra>
